<compile_context>
chip_gen: v5e
topology: v5e:2x2
jax: 0.10.0
libtpu: 0.0.40
codegen_flags: <defaults>
</compile_context>

<pallas_src>
import functools

import numpy as np
import jax
import jax.numpy as jnp
from jax.experimental import pallas as pl
from jax.experimental.pallas import tpu as pltpu


# ----------------------------------------------------------------------------
# Deterministic filter init: Daubechies-4 low-pass (8 taps == kernel_size)
# ----------------------------------------------------------------------------
DB4 = np.array(
    [-0.010597401784997278, 0.032883011666982945, 0.030841381835986965,
     -0.18703481171888114, -0.02798376941698385, 0.6308807679295904,
     0.7148465705525415, 0.23037781330885523],
    dtype=np.float32,
)


def _round_up(x, m):
    return (x + m - 1) // m * m


def _device_defaults():
    """Per-TPU-generation tiling defaults (tile rows, banded threshold, VMEM budget)."""
    kind = ""
    try:
        kind = jax.devices()[0].device_kind.lower()
    except Exception:
        pass
    if ("v5 lite" in kind) or ("v5e" in kind) or ("v5lite" in kind):
        # ridge ~240 flop/byte -> dense conv-as-matmul turns MXU-bound near L~700
        return {"tile_m": 1024, "banded_min_w": 768, "vmem_budget": 96 << 20}
    if ("v6" in kind) or ("trillium" in kind):
        return {"tile_m": 1024, "banded_min_w": 2048, "vmem_budget": 96 << 20}
    if ("v7" in kind) or ("tpu7" in kind) or ("7x" in kind):
        # 64 MiB VMEM, 2 TensorCores
        return {"tile_m": 512, "banded_min_w": 1024, "vmem_budget": 44 << 20}
    return {"tile_m": 512, "banded_min_w": 1024, "vmem_budget": 48 << 20}


# ----------------------------------------------------------------------------
# Symmetric ("mirror including edge") padding along the last axis, reproducing
# the PyTorch `pad(...)` semantics exactly (used for the reference and for the
# pad-index map that is folded into the conv matrix).
# ----------------------------------------------------------------------------
def mirror_pad_last(x, padsize):
    W = x.shape[-1]
    i = padsize // W
    ipad = W
    jpad = padsize % W
    xp = x
    for _ in range(i):
        xp = jnp.concatenate(
            [jnp.flip(xp[..., :ipad], -1), xp, jnp.flip(xp[..., -ipad:], -1)], -1)
    if jpad == 0 and W % 2 == 0:
        return xp
    if W % 2 == 1:
        xp = jnp.concatenate(
            [jnp.flip(xp[..., :jpad], -1), xp, jnp.flip(xp[..., -jpad - 1:], -1)], -1)
    else:
        xp = jnp.concatenate(
            [jnp.flip(xp[..., :jpad], -1), xp, jnp.flip(xp[..., -jpad:], -1)], -1)
    return xp


# ----------------------------------------------------------------------------
# Pallas kernels: fused tanh(X @ [A_lo | A_hi]) with f32 accumulation.
# The cast to the compute dtype happens in-kernel (x arrives in its HBM dtype).
# ----------------------------------------------------------------------------
def _wn_dense_kernel(x_ref, a_ref, lo_ref, hi_ref):
    # x_ref: (TM, Kdim)  a_ref: (Kdim, 2*CW)  lo/hi_ref: (TM, CW)
    x = x_ref[...].astype(a_ref.dtype)
    y = jnp.dot(x, a_ref[...], preferred_element_type=jnp.float32)
    y = jnp.tanh(y)
    cw = lo_ref.shape[-1]
    lo_ref[...] = y[:, :cw].astype(lo_ref.dtype)
    hi_ref[...] = y[:, cw:].astype(hi_ref.dtype)


def _wn_banded_kernel(xp_ref, xc_ref, a_ref, lo_ref, hi_ref, *, conv_len, cw):
    # xp_ref: (TM, CW) lanes [cw*max(2t-1,0), +cw)   of x2d
    # xc_ref: (TM, 2CW) lanes [2cw*min(t,last), +2cw) of x2d
    # a_ref : (1, 3CW, 2CW)  -> rows [0,cw) multiply xp, rows [cw,3cw) multiply xc
    t = pl.program_id(1)
    p_off = cw * jnp.maximum(2 * t - 1, 0)
    c_off = 2 * cw * jnp.minimum(t, (conv_len - 1) // (2 * cw))
    # Lane masks: tail blocks may read past the true conv length; zero those
    # lanes so stale VMEM (possibly non-finite) never reaches the MXU.
    lane_p = jax.lax.broadcasted_iota(jnp.int32, xp_ref.shape, 1)
    lane_c = jax.lax.broadcasted_iota(jnp.int32, xc_ref.shape, 1)
    xp = jnp.where(lane_p < conv_len - p_off, xp_ref[...], 0.0).astype(a_ref.dtype)
    xc = jnp.where(lane_c < conv_len - c_off, xc_ref[...], 0.0).astype(a_ref.dtype)
    y = jnp.dot(xp, a_ref[0, :cw, :], preferred_element_type=jnp.float32)
    y = y + jnp.dot(xc, a_ref[0, cw:, :], preferred_element_type=jnp.float32)
    y = jnp.tanh(y)
    lo_ref[...] = y[:, :cw].astype(lo_ref.dtype)
    hi_ref[...] = y[:, cw:].astype(hi_ref.dtype)


# ----------------------------------------------------------------------------
# pallas_call wrappers
# ----------------------------------------------------------------------------
def _run_dense(x2d, a_mat, tm, cw, wo_cols, out_dtype, vmem_limit):
    n_rows, kdim = x2d.shape
    grid = (pl.cdiv(n_rows, tm),)          # 1-D row grid -> megacore shards rows
    lo, hi = pl.pallas_call(
        _wn_dense_kernel,
        out_shape=(jax.ShapeDtypeStruct((n_rows, wo_cols), out_dtype),
                   jax.ShapeDtypeStruct((n_rows, wo_cols), out_dtype)),
        grid_spec=pltpu.PrefetchScalarGridSpec(
            num_scalar_prefetch=0,
            grid=grid,
            in_specs=[
                pl.BlockSpec((tm, kdim), lambda m: (m, 0)),
                # shared conv matrix: constant block index -> resident in VMEM
                pl.BlockSpec((kdim, 2 * cw), lambda m: (0, 0)),
            ],
            out_specs=[
                pl.BlockSpec((tm, cw), lambda m: (m, 0)),
                pl.BlockSpec((tm, cw), lambda m: (m, 0)),
            ]),
        compiler_params=pltpu.CompilerParams(
            dimension_semantics=("parallel",),
            vmem_limit_bytes=int(vmem_limit)),
    )(x2d, a_mat)
    return lo, hi


def _run_banded(x2d, a_bands, tm, cw, wo_cols, out_dtype, vmem_limit):
    n_rows, L = x2d.shape
    num_j = a_bands.shape[0]
    max_curr = (L - 1) // (2 * cw)
    kernel = functools.partial(_wn_banded_kernel, conv_len=L, cw=cw)
    grid = (pl.cdiv(n_rows, tm), num_j)    # rows leading & parallel (v7x sharding)
    lo, hi = pl.pallas_call(
        kernel,
        out_shape=(jax.ShapeDtypeStruct((n_rows, wo_cols), out_dtype),
                   jax.ShapeDtypeStruct((n_rows, wo_cols), out_dtype)),
        grid_spec=pltpu.PrefetchScalarGridSpec(
            num_scalar_prefetch=0,
            grid=grid,
            in_specs=[
                # two lane-aligned views of the SAME x2d (no duplicated HBM slab)
                pl.BlockSpec((tm, cw),
                             lambda m, t: (m, jnp.maximum(2 * t - 1, 0))),
                pl.BlockSpec((tm, 2 * cw),
                             lambda m, t: (m, jnp.minimum(t, max_curr))),
                # per-column-tile banded conv matrix (small, re-fetched per step)
                pl.BlockSpec((1, 3 * cw, 2 * cw), lambda m, t: (t, 0, 0)),
            ],
            out_specs=[
                pl.BlockSpec((tm, cw), lambda m, t: (m, t)),
                pl.BlockSpec((tm, cw), lambda m, t: (m, t)),
            ]),
        compiler_params=pltpu.CompilerParams(
            dimension_semantics=("parallel", "arbitrary"),
            vmem_limit_bytes=int(vmem_limit)),
    )(x2d, x2d, a_bands)
    return lo, hi


# ----------------------------------------------------------------------------
# Banded conv-matrix construction.
# For output-column tile t the needed input lanes are [2*cw*t - padsize,
# 2*cw*(t+1)).  They are covered by the "prev" cw-wide block and the "curr"
# 2*cw-wide block used in _run_banded; each lane's taps are assigned to
# exactly one of the two sub-matrices (prev wins on overlap).
# ----------------------------------------------------------------------------
def _build_banded_a(a_lo, a_hi, cw, num_j, L):
    Wo = a_lo.shape[1]
    wpad = num_j * cw - Wo
    a_lo_f = jnp.pad(a_lo, ((0, 0), (0, wpad)))
    a_hi_f = jnp.pad(a_hi, ((0, 0), (0, wpad)))
    max_curr = (L - 1) // (2 * cw)

    def rows(a, off, size, excl):
        r = off + jnp.arange(size)
        ok = r < L
        if excl is not None:
            ok = ok & ~((r >= excl[0]) & (r < excl[1]))
        return jnp.where(ok[:, None], a[jnp.clip(r, 0, L - 1)], 0.0)

    tiles = []
    for t in range(num_j):
        cl = a_lo_f[:, t * cw:(t + 1) * cw]
        ch = a_hi_f[:, t * cw:(t + 1) * cw]
        p_off = cw * max(2 * t - 1, 0)
        c_off = 2 * cw * min(t, max_curr)
        if t == 0:
            prev = jnp.zeros((cw, 2 * cw), jnp.float32)
            excl = None
        else:
            prev = jnp.concatenate([rows(cl, p_off, cw, None),
                                    rows(ch, p_off, cw, None)], axis=1)
            excl = (p_off, p_off + cw)
        curr = jnp.concatenate([rows(cl, c_off, 2 * cw, excl),
                                rows(ch, c_off, 2 * cw, excl)], axis=1)
        tiles.append(jnp.concatenate([prev, curr], axis=0))      # (3cw, 2cw)
    return jnp.stack(tiles, axis=0)                               # (num_j, 3cw, 2cw)


# ----------------------------------------------------------------------------
# Forward pass equivalent to WN_SubBlock.forward
# ----------------------------------------------------------------------------
def wn_subblock_forward(x, filter_init, kernel_size=8, horizontal=True,
                        compute_dtype=jnp.bfloat16, out_dtype=jnp.float32,
                        tile_m=None, col_tile=128, banded_min_w=None):
    """Returns (low_coeff, high_coeff), each (N, C, Ho/H, W/Wo) in out_dtype."""
    x = jnp.asarray(x)
    if not jnp.issubdtype(x.dtype, jnp.floating):
        x = x.astype(jnp.float32)
    N, C, H, W = x.shape
    K = int(kernel_size)
    padsize = K - 2
    cw = int(col_tile)
    if cw % 128 != 0:
        raise ValueError("col_tile must be a multiple of 128")

    cfg = _device_defaults()
    tile_m = cfg["tile_m"] if tile_m is None else int(tile_m)
    banded_min_w = cfg["banded_min_w"] if banded_min_w is None else int(banded_min_w)
    vmem_budget = cfg["vmem_budget"]

    # Depthwise taps: identical for every channel at init (low = tile(f, C)),
    # so a single shared conv matrix serves all channels -> fused GEMM.
    # TODO(synk): if kernel_Low/kernel_High become independently trainable per
    # channel, this shared-A collapse must fall back to per-channel matrices.
    f_lo = jnp.asarray(filter_init, jnp.float32).reshape(-1)
    sign = jnp.asarray([(-1.0) ** i for i in range(K)], jnp.float32)
    f_hi = jnp.flip(f_lo) * sign                      # get_cmf
    # TODO(synk): the forward-time reassignment of kernel_High.weight when
    # trainable[1] is False equals f_hi at init, so it is a no-op here.

    if not horizontal:
        # convolve along H: swap H<->W so the conv axis is the lane (last) axis.
        # TODO(synk): a left-multiply (sublane-axis) kernel would avoid these
        # wrapper transposes of the input and both outputs.
        x = jnp.transpose(x, (0, 1, 3, 2))
    _, _, R, L = x.shape                              # rows-per-image, conv length

    # Pad-index map (folds the mirror pad into the conv matrix).
    src = mirror_pad_last(jnp.arange(L, dtype=jnp.int32), padsize)   # (Lp,)
    Lp = int(src.shape[0])
    Wo = (Lp - K) // 2 + 1

    # B[i, j] = f[i - 2j] on the padded axis; fold pad: A[w, j] = sum over
    # padded rows i with src[i] == w.
    ii = jnp.arange(Lp)[:, None]
    jj = jnp.arange(Wo)[None, :]
    kk = ii - 2 * jj
    valid = (kk >= 0) & (kk < K)
    kc = jnp.clip(kk, 0, K - 1)
    a_lo = jnp.zeros((L, Wo), jnp.float32).at[src].add(jnp.where(valid, f_lo[kc], 0.0))
    a_hi = jnp.zeros((L, Wo), jnp.float32).at[src].add(jnp.where(valid, f_hi[kc], 0.0))

    M = N * C * R
    x2d = x.reshape(M, L)                  # stays in HBM dtype; cast is in-kernel
    x_bytes = x2d.dtype.itemsize
    c_bytes = jnp.dtype(compute_dtype).itemsize
    o_bytes = jnp.dtype(out_dtype).itemsize

    num_j = -(-Wo // cw)
    use_banded = (num_j > 1) and (L >= max(2 * cw, banded_min_w))

    if use_banded:
        # Block-banded GEMM: caps the MXU FLOP waste of conv-as-matmul for
        # wide conv axes.  Input is read via two aligned views of x2d.
        a_bands = _build_banded_a(a_lo, a_hi, cw, num_j, L).astype(compute_dtype)
        fixed = 2 * (3 * cw) * (2 * cw) * c_bytes + (4 << 20)
        per_row = 2 * (3 * cw) * x_bytes + 4 * cw * o_bytes
        cap = max(8, min(tile_m, (vmem_budget - fixed) // per_row))
        tm = int(max(8, min(_round_up(M, 8), (cap // 8) * 8)))
        lo2d, hi2d = _run_banded(x2d, a_bands, tm, cw, Wo, out_dtype, vmem_budget)
        lo = lo2d.reshape(N, C, R, Wo)
        hi = hi2d.reshape(N, C, R, Wo)
    else:
        # Dense GEMM; for narrow outputs pack g row-groups per lane tile with a
        # block-diagonal conv matrix so the output lane dim and GEMM K are dense.
        g0 = max(1, cw // Wo) if Wo < cw else 1
        g = 1
        for d in range(g0, 0, -1):
            if M % d == 0:
                g = d
                break
        if g < max(1, g0 // 2):
            g = g0                                    # accept a small row pad
        rows_pack = -(-M // g) * g
        xg = x2d
        if rows_pack != M:
            xg = jnp.pad(xg, ((0, rows_pack - M), (0, 0)))
        mg = rows_pack // g
        xg = xg.reshape(mg, g * L)

        g_wo = g * Wo
        cwo = _round_up(g_wo, 128)                    # lane-dense output width
        a_lo_p = jnp.zeros((g * L, cwo), jnp.float32)
        a_hi_p = jnp.zeros((g * L, cwo), jnp.float32)
        for i in range(g):
            a_lo_p = a_lo_p.at[i * L:(i + 1) * L, i * Wo:(i + 1) * Wo].set(a_lo)
            a_hi_p = a_hi_p.at[i * L:(i + 1) * L, i * Wo:(i + 1) * Wo].set(a_hi)
        a_mat = jnp.concatenate([a_lo_p, a_hi_p], axis=1).astype(compute_dtype)

        fixed = 2 * a_mat.shape[0] * a_mat.shape[1] * c_bytes + (4 << 20)
        per_row = 2 * _round_up(g * L, 128) * x_bytes + 4 * cwo * o_bytes
        cap = max(8, min(tile_m, (vmem_budget - fixed) // per_row))
        tm = int(max(8, min(_round_up(mg, 8), (cap // 8) * 8)))
        lo2d, hi2d = _run_dense(xg, a_mat, tm, cwo, g_wo, out_dtype, vmem_budget)
        lo = lo2d.reshape(rows_pack, Wo)[:M].reshape(N, C, R, Wo)
        hi = hi2d.reshape(rows_pack, Wo)[:M].reshape(N, C, R, Wo)

    if not horizontal:
        lo = jnp.transpose(lo, (0, 1, 3, 2))
        hi = jnp.transpose(hi, (0, 1, 3, 2))
    return lo, hi


# ----------------------------------------------------------------------------
# Pure-JAX reference (lax depthwise conv) for correctness checking
# ----------------------------------------------------------------------------
def reference_forward(x, filter_init_col, kernel_size=8, horizontal=True):
    N, C, H, W = x.shape
    K = kernel_size
    padsize = K - 2
    f = np.asarray(filter_init_col, np.float32).reshape(-1)
    low_w = np.tile(f.reshape(1, 1, 1, K), (C, 1, 1, 1))                  # (C,1,1,K)
    sign = np.array([(-1.0) ** i for i in range(K)], np.float32)
    high_w = np.flip(low_w, axis=3) * sign.reshape(1, 1, 1, K)

    if horizontal:
        strides = (1, 2)
        xp = mirror_pad_last(x, padsize)
    else:
        strides = (2, 1)
        low_w = low_w.transpose(0, 1, 3, 2)                               # (C,1,K,1)
        high_w = high_w.transpose(0, 1, 3, 2)
        xp = jnp.transpose(
            mirror_pad_last(jnp.transpose(x, (0, 1, 3, 2)), padsize), (0, 1, 3, 2))

    dn = jax.lax.conv_dimension_numbers(xp.shape, low_w.shape, ("NCHW", "OIHW", "NCHW"))
    lo = jnp.tanh(jax.lax.conv_general_dilated(
        xp, jnp.asarray(low_w), strides, "VALID",
        dimension_numbers=dn, feature_group_count=C))
    hi = jnp.tanh(jax.lax.conv_general_dilated(
        xp, jnp.asarray(high_w), strides, "VALID",
        dimension_numbers=dn, feature_group_count=C))
    return lo, hi


if __name__ == "__main__":
    K = 8
    filter_init = jnp.asarray(DB4).reshape(1, 1, K, 1)   # PyTorch ctor arg shape

    # 1) small NCHW input, both orientations: exact f32 path + fast bf16 path
    #    (narrow Wo -> exercises the row-packed dense GEMM)
    x = jax.random.normal(jax.random.PRNGKey(0), (2, 3, 16, 16), dtype=jnp.float32)
    for horizontal in (True, False):
        ref_lo, ref_hi = reference_forward(x, filter_init, K, horizontal)
        lo, hi = wn_subblock_forward(x, filter_init, K, horizontal,
                                     compute_dtype=jnp.float32)
        jax.block_until_ready((lo, hi))
        np.testing.assert_allclose(np.asarray(lo), np.asarray(ref_lo), rtol=1e-5, atol=1e-5)
        np.testing.assert_allclose(np.asarray(hi), np.asarray(ref_hi), rtol=1e-5, atol=1e-5)

        lo16, hi16 = wn_subblock_forward(x, filter_init, K, horizontal,
                                         compute_dtype=jnp.bfloat16)
        jax.block_until_ready((lo16, hi16))
        np.testing.assert_allclose(np.asarray(lo16), np.asarray(ref_lo), rtol=3e-2, atol=3e-2)
        np.testing.assert_allclose(np.asarray(hi16), np.asarray(ref_hi), rtol=3e-2, atol=3e-2)

    # 2) bf16 outputs (f32 accumulate + f32 tanh in-kernel)
    ref_lo, ref_hi = reference_forward(x, filter_init, K, True)
    lo_b, hi_b = wn_subblock_forward(x, filter_init, K, True,
                                     compute_dtype=jnp.bfloat16, out_dtype=jnp.bfloat16)
    jax.block_until_ready((lo_b, hi_b))
    np.testing.assert_allclose(np.asarray(lo_b.astype(jnp.float32)),
                               np.asarray(ref_lo), rtol=3e-2, atol=3e-2)
    np.testing.assert_allclose(np.asarray(hi_b.astype(jnp.float32)),
                               np.asarray(ref_hi), rtol=3e-2, atol=3e-2)

    # 3) wider conv axis: exercise the block-banded GEMM path (exact f32 check)
    xw = jax.random.normal(jax.random.PRNGKey(1), (1, 2, 8, 384), dtype=jnp.float32)
    ref_lo, ref_hi = reference_forward(xw, filter_init, K, True)
    lo, hi = wn_subblock_forward(xw, filter_init, K, True,
                                 compute_dtype=jnp.float32, banded_min_w=256)
    jax.block_until_ready((lo, hi))
    np.testing.assert_allclose(np.asarray(lo), np.asarray(ref_lo), rtol=1e-4, atol=1e-4)
    np.testing.assert_allclose(np.asarray(hi), np.asarray(ref_hi), rtol=1e-4, atol=1e-4)

    print("KERNEL_OK")
</pallas_src>

<mosaic_0001>
module attributes {stable_mosaic.version = 11 : i64} {
  func.func @_wn_dense_kernel(%arg0: i32, %arg1: memref<16x128xf32, #tpu.memory_space<vmem>>, %arg2: memref<128x256xf32, #tpu.memory_space<vmem>>, %arg3: memref<16x128xf32, #tpu.memory_space<vmem>>, %arg4: memref<16x128xf32, #tpu.memory_space<vmem>>) attributes {dimension_semantics = [#tpu.dimension_semantics<parallel>], iteration_bounds = array<i64: 1>, scalar_prefetch = 0 : i64, scratch_operands = 0 : i64, tpu.core_type = #tpu.core_type<tc>, window_params = [{transform_indices = @transform_0, window_bounds = array<i64: 16, 128>}, {pipeline_mode = #tpu.pipeline_mode<synchronous>, transform_indices = @transform_1, window_bounds = array<i64: 128, 256>}, {transform_indices = @transform_2, window_bounds = array<i64: 16, 128>}, {transform_indices = @transform_3, window_bounds = array<i64: 16, 128>}]} {
    %c0 = arith.constant 0 : index
    %c0_0 = arith.constant 0 : index
    %0 = vector.load %arg1[%c0, %c0_0] : memref<16x128xf32, #tpu.memory_space<vmem>>, vector<16x128xf32>
    %c0_1 = arith.constant 0 : index
    %c0_2 = arith.constant 0 : index
    %1 = vector.load %arg2[%c0_1, %c0_2] : memref<128x256xf32, #tpu.memory_space<vmem>>, vector<128x256xf32>
    %cst = arith.constant dense<0.000000e+00> : vector<16x256xf32>
    %2 = tpu.matmul %0, %1, %cst {dimension_numbers = #tpu.dot_dimension_numbers<[1], [0], [0], [1], [0, 0, 1, 1], [], []>} : vector<16x128xf32>, vector<128x256xf32>, vector<16x256xf32> -> vector<16x256xf32>
    %3 = math.tanh %2 : vector<16x256xf32>
    %4 = vector.extract_strided_slice %3 {offsets = [0, 0], sizes = [16, 128], strides = [1, 1]} : vector<16x256xf32> to vector<16x128xf32>
    %c0_3 = arith.constant 0 : index
    %c0_4 = arith.constant 0 : index
    %5 = vector.load %arg3[%c0_3, %c0_4] : memref<16x128xf32, #tpu.memory_space<vmem>>, vector<16x128xf32>
    tpu.vector_store %arg3[%c0_3, %c0_4], %4 {strides = array<i32>} : memref<16x128xf32, #tpu.memory_space<vmem>>, vector<16x128xf32>,
    %6 = vector.extract_strided_slice %3 {offsets = [0, 128], sizes = [16, 128], strides = [1, 1]} : vector<16x256xf32> to vector<16x128xf32>
    %c0_5 = arith.constant 0 : index
    %c0_6 = arith.constant 0 : index
    %7 = vector.load %arg4[%c0_5, %c0_6] : memref<16x128xf32, #tpu.memory_space<vmem>>, vector<16x128xf32>
    tpu.vector_store %arg4[%c0_5, %c0_6], %6 {strides = array<i32>} : memref<16x128xf32, #tpu.memory_space<vmem>>, vector<16x128xf32>,
    return
  }
  func.func @transform_0(%arg0: i32) -> (i32, i32) {
    %c0_i32 = arith.constant 0 : i32
    %c0_i32_0 = arith.constant 0 : i32
    return %arg0, %c0_i32 : i32, i32
  }
  func.func @transform_1(%arg0: i32) -> (i32, i32) {
    %c0_i32 = arith.constant 0 : i32
    %c0_i32_0 = arith.constant 0 : i32
    %c0_i32_1 = arith.constant 0 : i32
    return %c0_i32, %c0_i32_0 : i32, i32
  }
  func.func @transform_2(%arg0: i32) -> (i32, i32) {
    %c0_i32 = arith.constant 0 : i32
    %c0_i32_0 = arith.constant 0 : i32
    return %arg0, %c0_i32 : i32, i32
  }
  func.func @transform_3(%arg0: i32) -> (i32, i32) {
    %c0_i32 = arith.constant 0 : i32
    %c0_i32_0 = arith.constant 0 : i32
    return %arg0, %c0_i32 : i32, i32
  }
}

</mosaic_0001>

<bundles_post_ra>
// kernel: tpu_custom_call.1
= control target key start
LH: loop header
LB: loop body
LE: loop exit
PB: predicated region body
PF: predicated region fallthrough
CT: control target
= control target key end

     0   :  { %9 = vsyncpa [#allocation3], 0  ;;  %s374_s0 = inlined_call_operand.hbm [shape: f32[12,128], index: 0, kind: input, shape index: {}]   ;;  %s375_s1 = inlined_call_operand.hbm [shape: f32[128,256], index: 1, kind: input, shape index: {}]   ;;  %s376_s2 = inlined_call_operand.hbm [shape: f32[12,88], index: 2, kind: output, shape index: {0}]   ;;  %s377_s3 = inlined_call_operand.hbm [shape: f32[12,88], index: 3, kind: output, shape index: {1}]  }
   0x1   :  { %10 = vsyncpa [#allocation6], 0 }
   0x2   :  { %11 = vsyncpa [#allocation4], 0 }
   0x3   :  { %12 = vsyncpa [#allocation9], 0  ;;  %s17_s14 = sshll.u32 %s374_s0, 4  ;;  %s325_s15 = smov [#allocation2]   ;;  %s18_s14 = int_to_ptr.hbm [resolvable:$true] %s17_s14 }
   0x4   :  { %s19_s16 = sshll.u32 %s325_s15, 4  ;;  %s30_s19 = sshll.u32 %s375_s1, 4  ;;  %s20_s16 = int_to_ptr.vmem [resolvable:$true] %s19_s16  ;;  %s31_s19 = int_to_ptr.hbm [resolvable:$true] %s30_s19 }
   0x5   :  { %s326_s20 = smov 128   ;;  %s327_s21 = smov 8  }
   0x6   :  { %25 = dma.hbm_to_vmem [thread:$0]  %s18_s14, 256, %s20_s16, [#allocation3], %s326_s20, %s326_s20, %s327_s21  }
   0x7   :  { %s328_s22 = smov [#allocation5]   ;;  %s329_s24 = smov 256  }
   0x8   :  { %s32_s23 = sshll.u32 %s328_s22, 4  ;;  %s330_s0 = smov 16   ;;  %s33_s23 = int_to_ptr.vmem [resolvable:$true] %s32_s23 }
   0x9   :  { %38 = dma.hbm_to_vmem [thread:$0]  %s31_s19, 4096, %s33_s23, [#allocation6], %s329_s24, %s329_s24, %s330_s0  }
   0xa   :  { %317 = dma.done.wait [#allocation3], 256  }
   0xb   :  { %318 = vsyncadd [#allocation3], 4294967040 }
   0xc   :  { %319 = dma.done.wait [#allocation6], 4096  }
   0xd   :  { %320 = vsyncadd [#allocation6], 4294963200  ;;  %v79_v0 = vld [vmem:[#allocation5 + $0xf0] sm:$0xff]  ;;  %v80_v1 = vld [vmem:[#allocation5 + $0xf8] sm:$0xff]  ;;  %s331_s1 = smov [#allocation7]   ;;  %s141_s28 = sshll.u32 %s376_s2, 4  ;;  %s142_s28 = int_to_ptr.hbm [resolvable:$true] %s141_s28 }
   0xe   :  { %v77_v2 = vld [vmem:[#allocation5 + $0xe0] sm:$0xff]  ;;  %173 = vmatpush.msra.mxu2 %v79_v0  ;;  %189 = vmatpush.msra.mxu3 %v80_v1  ;;  %v78_v3 = vld [vmem:[#allocation5 + $0xe8] sm:$0xff]  ;;  %v75_v4 = vld [vmem:[#allocation5 + $0xd0] sm:$0xff]  ;;  %s139_s25 = sshll.u32 %s331_s1, 4  ;;  %s332_s29 = smov [#allocation8]   ;;  %s140_s25 = int_to_ptr.vmem [resolvable:$true] %s139_s25 }
   0xf   :  { %v76_v5 = vld [vmem:[#allocation5 + $0xd8] sm:$0xff]  ;;  %81 = vmatpush.msra.mxu0 %v79_v0  ;;  %104 = vmatpush.msra.mxu1 %v80_v1  ;;  %v73_v6 = vld [vmem:[#allocation5 + $0xc0] sm:$0xff]  ;;  %v74_v7 = vld [vmem:[#allocation5 + $0xc8] sm:$0xff]  ;;  %s152_s30 = sshll.u32 %s332_s29, 4  ;;  %s154_s6 = sshll.u32 %s377_s3, 4  ;;  %s153_s30 = int_to_ptr.vmem [resolvable:$true] %s152_s30  ;;  %s155_s6 = int_to_ptr.hbm [resolvable:$true] %s154_s6 }
  0x10   :  { %174 = vmatpush.msra.mxu2 %v77_v2  ;;  %190 = vmatpush.msra.mxu3 %v78_v3  ;;  %v71_v8 = vld [vmem:[#allocation5 + $0xb0] sm:$0xff]  ;;  %v72_v9 = vld [vmem:[#allocation5 + $0xb8] sm:$0xff]  ;;  %v69_v10 = vld [vmem:[#allocation5 + $0xa0] sm:$0xff] }
  0x11   :  { %82 = vmatpush.msra.mxu0 %v77_v2  ;;  %105 = vmatpush.msra.mxu1 %v78_v3  ;;  %v70_v11 = vld [vmem:[#allocation5 + $0xa8] sm:$0xff]  ;;  %v67_v12 = vld [vmem:[#allocation5 + $0x90] sm:$0xff]  ;;  %v68_v13 = vld [vmem:[#allocation5 + $0x98] sm:$0xff] }
  0x12   :  { %175 = vmatpush.msra.mxu2 %v75_v4  ;;  %191 = vmatpush.msra.mxu3 %v76_v5  ;;  %v65_v14 = vld [vmem:[#allocation5 + $0x80] sm:$0xff]  ;;  %v66_v15 = vld [vmem:[#allocation5 + $0x88] sm:$0xff]  ;;  %v63_v16 = vld [vmem:[#allocation5 + $0x70] sm:$0xff] }
  0x13   :  { %83 = vmatpush.msra.mxu0 %v75_v4  ;;  %106 = vmatpush.msra.mxu1 %v76_v5  ;;  %v64_v17 = vld [vmem:[#allocation5 + $0x78] sm:$0xff]  ;;  %v61_v18 = vld [vmem:[#allocation5 + $0x60] sm:$0xff]  ;;  %v62_v19 = vld [vmem:[#allocation5 + $0x68] sm:$0xff] }
  0x14   :  { %176 = vmatpush.msra.mxu2 %v73_v6  ;;  %192 = vmatpush.msra.mxu3 %v74_v7  ;;  %v59_v20 = vld [vmem:[#allocation5 + $0x50] sm:$0xff]  ;;  %v60_v21 = vld [vmem:[#allocation5 + $0x58] sm:$0xff]  ;;  %v57_v22 = vld [vmem:[#allocation5 + $0x40] sm:$0xff] }
  0x15   :  { %84 = vmatpush.msra.mxu0 %v73_v6  ;;  %107 = vmatpush.msra.mxu1 %v74_v7  ;;  %v58_v23 = vld [vmem:[#allocation5 + $0x48] sm:$0xff]  ;;  %v55_v24 = vld [vmem:[#allocation5 + $0x30] sm:$0xff]  ;;  %v56_v25 = vld [vmem:[#allocation5 + $0x38] sm:$0xff] }
  0x16   :  { %177 = vmatpush.msra.mxu2 %v71_v8  ;;  %193 = vmatpush.msra.mxu3 %v72_v9  ;;  %v53_v26 = vld [vmem:[#allocation5 + $0x20] sm:$0xff]  ;;  %v54_v27 = vld [vmem:[#allocation5 + $0x28] sm:$0xff]  ;;  %v51_v28 = vld [vmem:[#allocation5 + $0x10] sm:$0xff] }
  0x17   :  { %85 = vmatpush.msra.mxu0 %v71_v8  ;;  %108 = vmatpush.msra.mxu1 %v72_v9  ;;  %v52_v29 = vld [vmem:[#allocation5 + $0x18] sm:$0xff]  ;;  %v49_v30 = vld [vmem:[#allocation5] sm:$0xff]  ;;  %v50_v31 = vld [vmem:[#allocation5 + $0x8] sm:$0xff] }
  0x18   :  { %178 = vmatpush.msra.mxu2 %v69_v10  ;;  %194 = vmatpush.msra.mxu3 %v70_v11  ;;  %v48_v32 = vld [vmem:[#allocation2 + $0x8] sm:$0xff]  ;;  %v47_v33 = vld [vmem:[#allocation2] sm:$0xff] }
  0x19   :  { %86 = vmatpush.msra.mxu0 %v69_v10  ;;  %109 = vmatpush.msra.mxu1 %v70_v11 }
  0x1a   :  { %179 = vmatpush.msra.mxu2 %v67_v12  ;;  %195 = vmatpush.msra.mxu3 %v68_v13 }
  0x1b   :  { %87 = vmatpush.msra.mxu0 %v67_v12  ;;  %110 = vmatpush.msra.mxu1 %v68_v13 }
  0x1c   :  { %180 = vmatpush.msra.mxu2 %v65_v14  ;;  %196 = vmatpush.msra.mxu3 %v66_v15 }
  0x1d   :  { %88 = vmatpush.msra.mxu0 %v65_v14  ;;  %111 = vmatpush.msra.mxu1 %v66_v15 }
  0x1e   :  { %181 = vmatpush.msra.mxu2 %v63_v16  ;;  %197 = vmatpush.msra.mxu3 %v64_v17 }
  0x1f   :  { %89 = vmatpush.msra.mxu0 %v63_v16  ;;  %112 = vmatpush.msra.mxu1 %v64_v17 }
  0x20   :  { %182 = vmatpush.msra.mxu2 %v61_v18  ;;  %198 = vmatpush.msra.mxu3 %v62_v19 }
  0x21   :  { %90 = vmatpush.msra.mxu0 %v61_v18  ;;  %113 = vmatpush.msra.mxu1 %v62_v19 }
  0x22   :  { %183 = vmatpush.msra.mxu2 %v59_v20  ;;  %199 = vmatpush.msra.mxu3 %v60_v21 }
  0x23   :  { %91 = vmatpush.msra.mxu0 %v59_v20  ;;  %114 = vmatpush.msra.mxu1 %v60_v21 }
  0x24   :  { %184 = vmatpush.msra.mxu2 %v57_v22  ;;  %200 = vmatpush.msra.mxu3 %v58_v23 }
  0x25   :  { %92 = vmatpush.msra.mxu0 %v57_v22  ;;  %115 = vmatpush.msra.mxu1 %v58_v23 }
  0x26   :  { %185 = vmatpush.msra.mxu2 %v55_v24  ;;  %201 = vmatpush.msra.mxu3 %v56_v25 }
  0x27   :  { %93 = vmatpush.msra.mxu0 %v55_v24  ;;  %116 = vmatpush.msra.mxu1 %v56_v25 }
  0x28   :  { %186 = vmatpush.msra.mxu2 %v53_v26  ;;  %202 = vmatpush.msra.mxu3 %v54_v27 }
  0x29   :  { %94 = vmatpush.msra.mxu0 %v53_v26  ;;  %117 = vmatpush.msra.mxu1 %v54_v27 }
  0x2a   :  { %187 = vmatpush.msra.mxu2 %v51_v28  ;;  %203 = vmatpush.msra.mxu3 %v52_v29 }
  0x2b   :  { %95 = vmatpush.msra.mxu0 %v51_v28  ;;  %118 = vmatpush.msra.mxu1 %v52_v29 }
  0x2c   :  { %188 = vmatpush.msra.mxu2 %v49_v30  ;;  %204 = vmatpush.msra.mxu3 %v50_v31 }
  0x2d   :  { %100 = vmatmul.f32.vlgmr.msra.gmra.mxu2 %v48_v32  ;;  %123 = vmatmul.f32.vlgmr.msra.gmra.mxu3 %v48_v32 }
  0x2e   :  { %96 = vmatpush.msra.mxu0 %v49_v30  ;;  %119 = vmatpush.msra.mxu1 %v50_v31 }
  0x2f   :  { %97 = vmatmul.f32.vlgmr.msra.gmra.mxu0 %v47_v33  ;;  %120 = vmatmul.f32.vlgmr.msra.gmra.mxu1 %v47_v33 }
  0xac   :  { %v98_v34 = vpop.f32.mrf.mxu0  ;;  %v121_v35 = vpop.f32.mrf.mxu1 }
  0xad   :  { %213 = vtanh.f32 %v98_v34 }
  0xae   :  { %215 = vtanh.f32 %v121_v35 }
  0xb0   :  { %v101_v36 = vpop.f32.mrf.mxu2  ;;  %v124_v37 = vpop.f32.mrf.mxu3 }
  0xb1   :  { %217 = vtanh.f32 %v101_v36 }
  0xb2   :  { %219 = vtanh.f32 %v124_v37 }
  0xb3   :  { %v214_v38 = vpop.eup %213 }
  0xb4   :  { %v216_v39 = vpop.eup %215  ;;  %131 = vst [vmem:[#allocation7] sm:$0xff] %v214_v38 }
  0xb5   :  { %133 = vst [vmem:[#allocation8] sm:$0xff] %v216_v39 }
  0xb7   :  { %v218_v40 = vpop.eup %217 }
  0xb8   :  { %v220_v41 = vpop.eup %219  ;;  %132 = vst [vmem:[#allocation7 + $0x8] sm:$0xff] %v218_v40 }
  0xb9   :  { %134 = vst [vmem:[#allocation8 + $0x8] sm:$0xff] %v220_v41  ;;  %147 = dma.vmem_to_hbm [thread:$0]  %s140_s25, 256, %s142_s28, [#allocation4], %s326_s20, %s326_s20, %s327_s21  }
  0xba   :  { %160 = dma.vmem_to_hbm [thread:$0]  %s153_s30, 256, %s155_s6, [#allocation9], %s326_s20, %s326_s20, %s327_s21  }
  0xbb   :  { %321 = dma.done.wait [#allocation4], 256  }
  0xbc   :  { %322 = vsyncadd [#allocation4], 4294967040 }
  0xbd   :  { %323 = dma.done.wait [#allocation9], 256  }
  0xbe   :  { %324 = vsyncadd [#allocation9], 4294967040 }
  0xbf   :  { %169 = vsyncpa [#allocation3], 1 }
  0xc0   :  { %170 = vsyncpa [#allocation6], 1 }
  0xc1   :  { %171 = vsyncpa [#allocation4], 1 }
  0xc2   :  { %172 = vsyncpa [#allocation9], 1 }

</bundles_post_ra>
